<compile_context>
chip_gen: v5e
topology: v5e:2x2
jax: 0.10.0
libtpu: 0.0.40
codegen_flags: <defaults>
</compile_context>

<pallas_src>
import functools

import jax
import jax.numpy as jnp
from jax.experimental import pallas as pl
from jax.experimental.pallas import tpu as pltpu

LANES = 128
SUBLANES = 8
ALIGN_ROWS = 32            # pad flat length to 32*128 elems: legal for f32/bf16/int8
MAX_TILE_ROWS = 8192       # 4 MiB/input/tile (f32); x2 inputs x2 buffers = 16 MiB
CHUNK_CANDIDATES = (1024, 512, 256, 128, 64, 32)   # inner strip-mine sizes
VMEM_LIMIT_BYTES = 40 * 1024 * 1024


def _round_up(n, m):
    return ((n + m - 1) // m) * m


@functools.lru_cache(maxsize=1)
def _num_tensorcores():
    """Best-effort TensorCores-per-chip (2 on v7x, 1 on v5e/v6e). Defaults to 1."""
    try:
        info = pltpu.get_tpu_info()
    except Exception:
        return 1
    for attr in ("num_cores", "num_tensorcores", "tensorcore_count",
                 "cores_per_chip", "num_cores_per_chip"):
        v = getattr(info, attr, None)
        if isinstance(v, int) and 1 <= v <= 8:
            return v
    return 1


def _focal_loss_kernel(s_ref, x_ref, t_ref, out_ref, acc_ref, *,
                       gamma, hard_labels, tile_rows, chunk_rows,
                       tiles_per_split):
    """Accumulate focal loss of one (tile_rows, 128) tile into VMEM.

    s_ref   : (2,) int32 SMEM (scalar prefetch): [n_full_chunks, rem_last]
    x_ref   : (tile_rows, 128) VMEM logits tile (native dtype)
    t_ref   : (tile_rows, 128) VMEM target tile (native dtype)
    out_ref : (1, 1) f32 SMEM per-split partial sum
    acc_ref : (8, 128) f32 VMEM accumulator scratch
    """
    c = pl.program_id(0)   # split (core) index
    i = pl.program_id(1)   # tile index within split

    @pl.when(i == 0)
    def _():
        acc_ref[...] = jnp.zeros_like(acc_ref)

    # All element counting is done in units of chunks so nothing overflows
    # int32 even for multi-billion-element inputs.
    n_full_chunks = s_ref[0]        # chunks that are completely valid
    rem_last = s_ref[1]             # valid elements in the single ragged chunk

    num_chunks = tile_rows // chunk_rows
    tile_first_chunk = (c * tiles_per_split + i) * num_chunks

    def chunk_loss(ci):
        r0 = pl.multiple_of(ci * chunk_rows, chunk_rows)
        x = x_ref[pl.ds(r0, chunk_rows), :].astype(jnp.float32)
        t = t_ref[pl.ds(r0, chunk_rows), :].astype(jnp.float32)

        # BCE-with-logits, exact simplification of the clamp/exp/log reference:
        #   x - x*t + max(-x,0) + log(exp(-max) + exp(-x-max))
        #     == max(x,0) - x*t + log1p(exp(-|x|))
        e_x = jnp.exp(-jnp.abs(x))          # EUP 1
        sp = jnp.log1p(e_x)                 # EUP 2
        bce = jnp.maximum(x, 0.0) - x * t + sp

        # invprobs = logsigmoid(-x * (2t - 1)), numerically stable form.
        z = -x * (t * 2.0 - 1.0)
        if hard_labels:
            # For t in {0,1}, |z| == |x|, so log1p(exp(-|z|)) == sp exactly.
            invprobs = jnp.minimum(z, 0.0) - sp
        else:
            invprobs = jnp.minimum(z, 0.0) - jnp.log1p(jnp.exp(-jnp.abs(z)))

        return jnp.exp(invprobs * gamma) * bce   # EUP 3 (hard) / 5 (soft)

    def fold(v):
        # (chunk_rows, 128) -> (8, 128) with pure VPU adds.
        return jnp.sum(v.reshape(chunk_rows // SUBLANES, SUBLANES, LANES), axis=0)

    def chunk_body(ci, carry):
        g = tile_first_chunk + ci            # global chunk index

        @pl.when(g < n_full_chunks)          # fast path: no mask machinery
        def _():
            acc_ref[...] += fold(chunk_loss(ci))

        @pl.when(jnp.logical_and(g == n_full_chunks, rem_last > 0))
        def _():                             # the single ragged chunk
            loss = chunk_loss(ci)
            row_ids = jax.lax.broadcasted_iota(jnp.int32, (chunk_rows, LANES), 0)
            lane_ids = jax.lax.broadcasted_iota(jnp.int32, (chunk_rows, LANES), 1)
            lidx = row_ids * LANES + lane_ids          # chunk-local flat index
            acc_ref[...] += fold(jnp.where(lidx < rem_last, loss, 0.0))

        # Chunks with g > n_full_chunks (tail of a partial/extra tile) do nothing.
        return carry

    jax.lax.fori_loop(0, num_chunks, chunk_body, 0)

    # Single cross-lane (XLU) reduce + SMEM scalar store per split.
    @pl.when(i == pl.num_programs(1) - 1)
    def _():
        out_ref[0, 0] = jnp.sum(acc_ref[...])


def focal_loss(x, target, gamma, *, hard_labels=False):
    """Mean binary focal loss matching the PyTorch FocalLoss module.

    Set hard_labels=True only when targets are exactly 0/1 (saves 2
    transcendentals per element); soft labels must use the default path.
    """
    if x.shape != target.shape:
        raise ValueError(
            f"Target size ({target.shape}) must be the same as input size ({x.shape})"
        )

    n_elem = int(x.size)
    xf = jnp.ravel(x)          # native dtype, no f32 copy in HBM
    tf = jnp.ravel(target)

    # Pad only to a 32-row (4096-element) boundary (layout-legal for f32/bf16/
    # int8 streaming); skip the pad copy entirely when already aligned.
    rows_needed = -(-n_elem // LANES)
    padded_rows = _round_up(max(rows_needed, 1), ALIGN_ROWS)
    pad = padded_rows * LANES - n_elem
    if pad:
        xf = jnp.pad(xf, (0, pad))
        tf = jnp.pad(tf, (0, pad))
    x2 = xf.reshape(padded_rows, LANES)
    t2 = tf.reshape(padded_rows, LANES)

    # Tile / inner-chunk sizing.
    tile_rows = min(MAX_TILE_ROWS, padded_rows)
    chunk_rows = ALIGN_ROWS
    for cand in CHUNK_CANDIDATES:
        if tile_rows % cand == 0:
            chunk_rows = cand
            break
    chunk_elems = chunk_rows * LANES

    num_tiles = -(-padded_rows // tile_rows)   # last grid block may be partial
    cores = _num_tensorcores()
    n_split = cores if (cores > 1 and num_tiles >= cores) else 1
    tiles_per_split = _round_up(num_tiles, n_split) // n_split
    max_block = num_tiles - 1

    # Scalar prefetch: chunk-granular element count (avoids int32 overflow).
    scalars = jnp.array([n_elem // chunk_elems, n_elem % chunk_elems],
                        dtype=jnp.int32)

    def in_map(c, i, s_ref):
        # Clamp so the (rare) extra tiles from the n_split round-up stay in
        # bounds; their compute is skipped by the in-kernel chunk guards.
        return (jnp.minimum(c * tiles_per_split + i, max_block), 0)

    in_spec = pl.BlockSpec((tile_rows, LANES), in_map)
    out_spec = pl.BlockSpec((1, 1), lambda c, i, s_ref: (c, 0),
                            memory_space=pltpu.SMEM)

    kernel = functools.partial(
        _focal_loss_kernel,
        gamma=float(gamma),
        hard_labels=bool(hard_labels),
        tile_rows=tile_rows,
        chunk_rows=chunk_rows,
        tiles_per_split=tiles_per_split,
    )

    eup_per_elem = 3 if hard_labels else 5
    bytes_accessed = int(x2.size * x2.dtype.itemsize
                         + t2.size * t2.dtype.itemsize
                         + n_split * 4 + scalars.size * 4)
    cost = pl.CostEstimate(flops=15 * n_elem,
                           transcendentals=eup_per_elem * n_elem,
                           bytes_accessed=bytes_accessed)

    partials = pl.pallas_call(
        kernel,
        out_shape=jax.ShapeDtypeStruct((n_split, 1), jnp.float32),
        grid_spec=pltpu.PrefetchScalarGridSpec(
            num_scalar_prefetch=1,
            grid=(n_split, tiles_per_split),
            in_specs=[in_spec, in_spec],
            out_specs=out_spec,
            scratch_shapes=[pltpu.VMEM((SUBLANES, LANES), jnp.float32)],
        ),
        compiler_params=pltpu.CompilerParams(
            dimension_semantics=("parallel", "arbitrary"),
            vmem_limit_bytes=VMEM_LIMIT_BYTES,
        ),
        cost_estimate=cost,
    )(scalars, x2, t2)

    return jnp.sum(partials) / jnp.float32(n_elem)


def _focal_loss_ref(x, target, gamma):
    """Pure-JAX reference mirroring the PyTorch module exactly."""
    x = x.astype(jnp.float32)
    t = target.astype(jnp.float32)
    max_val = jnp.maximum(-x, 0.0)
    loss = x - x * t + max_val + jnp.log(
        jnp.exp(-max_val) + jnp.exp(-x - max_val)
    )
    invprobs = jax.nn.log_sigmoid(-x * (t * 2.0 - 1.0))
    loss = jnp.exp(invprobs * gamma) * loss
    return jnp.mean(loss)


if __name__ == "__main__":
    key = jax.random.PRNGKey(0)
    k1, k2, k3, k4 = jax.random.split(key, 4)

    gamma = 2.0  # module __init__ arg

    # Case 1: NCHW-like logits with hard 0/1 targets (3-transcendental path,
    # exercises the pad + ragged-chunk mask).
    shape = (2, 4, 16, 16)
    x = jax.random.normal(k1, shape, dtype=jnp.float32)
    target = (jax.random.uniform(k2, shape) > 0.5).astype(jnp.float32)
    out = jax.block_until_ready(focal_loss(x, target, gamma, hard_labels=True))
    ref = _focal_loss_ref(x, target, gamma)
    assert jnp.allclose(out, ref, rtol=1e-5, atol=1e-6), (out, ref)

    # Case 2: odd-sized input with soft targets (general 5-transcendental path,
    # exercises full chunks + one masked ragged chunk in the same tile).
    shape2 = (3, 7, 53, 41)
    x2 = jax.random.normal(k3, shape2, dtype=jnp.float32)
    target2 = jax.random.uniform(k4, shape2, dtype=jnp.float32)
    out2 = jax.block_until_ready(focal_loss(x2, target2, gamma))
    ref2 = _focal_loss_ref(x2, target2, gamma)
    assert jnp.allclose(out2, ref2, rtol=1e-5, atol=1e-6), (out2, ref2)

    print("KERNEL_OK")
</pallas_src>

<mosaic_0001>
module attributes {stable_mosaic.version = 11 : i64} {
  func.func @_focal_loss_kernel(%arg0: i32, %arg1: i32, %arg2: memref<2xi32, #tpu.memory_space<smem>>, %arg3: memref<32x128xf32, #tpu.memory_space<vmem>>, %arg4: memref<32x128xf32, #tpu.memory_space<vmem>>, %arg5: memref<1x1xf32, #tpu.memory_space<smem>>, %arg6: memref<8x128xf32, #tpu.memory_space<vmem>>) attributes {dimension_semantics = [#tpu.dimension_semantics<parallel>, #tpu.dimension_semantics<arbitrary>], iteration_bounds = array<i64: 1, 1>, scalar_prefetch = 1 : i64, scratch_operands = 1 : i64, tpu.core_type = #tpu.core_type<tc>, window_params = [{transform_indices = @transform_0, window_bounds = array<i64: 32, 128>}, {transform_indices = @transform_1, window_bounds = array<i64: 32, 128>}, {transform_indices = @transform_2, window_bounds = array<i64: 1, 1>}]} {
    %c0_i32 = arith.constant 0 : i32
    %0 = arith.cmpi eq, %arg1, %c0_i32 : i32
    %1 = arith.extui %0 : i1 to i32
    %c0_i32_0 = arith.constant 0 : i32
    %2 = arith.cmpi ne, %1, %c0_i32_0 : i32
    scf.if %2 {
      %cst = arith.constant 0.000000e+00 : f32
      %20 = vector.broadcast %cst : f32 to vector<8x128xf32>
      %c0_9 = arith.constant 0 : index
      %c0_10 = arith.constant 0 : index
      %21 = vector.load %arg6[%c0_9, %c0_10] : memref<8x128xf32, #tpu.memory_space<vmem>>, vector<8x128xf32>
      tpu.vector_store %arg6[%c0_9, %c0_10], %20 {strides = array<i32>} : memref<8x128xf32, #tpu.memory_space<vmem>>, vector<8x128xf32>,
    } else {
    }
    %c0 = arith.constant 0 : index
    %3 = memref.load %arg2[%c0] : memref<2xi32, #tpu.memory_space<smem>>
    %c1 = arith.constant 1 : index
    %4 = memref.load %arg2[%c1] : memref<2xi32, #tpu.memory_space<smem>>
    %c1_i32 = arith.constant 1 : i32
    %5 = arith.muli %arg0, %c1_i32 : i32
    %6 = arith.addi %5, %arg1 : i32
    %c1_i32_1 = arith.constant 1 : i32
    %7 = arith.muli %6, %c1_i32_1 : i32
    %c0_i32_2 = arith.constant 0 : i32
    %8 = arith.addi %7, %c0_i32_2 : i32
    %9 = arith.cmpi slt, %8, %3 : i32
    %10 = arith.extui %9 : i1 to i32
    %c0_i32_3 = arith.constant 0 : i32
    %11 = arith.cmpi ne, %10, %c0_i32_3 : i32
    scf.if %11 {
      %c0_9 = arith.constant 0 : index
      %c0_10 = arith.constant 0 : index
      %20 = vector.load %arg6[%c0_9, %c0_10] : memref<8x128xf32, #tpu.memory_space<vmem>>, vector<8x128xf32>
      %c32_i32 = arith.constant 32 : i32
      %21 = arith.muli %c0_i32_2, %c32_i32 : i32
      %22 = tpu.assume_multiple %21, 32 : i32
      %23 = arith.index_cast %22 : i32 to index
      %c0_11 = arith.constant 0 : index
      %24 = vector.load %arg3[%23, %c0_11] : memref<32x128xf32, #tpu.memory_space<vmem>>, vector<32x128xf32>
      %25 = arith.index_cast %22 : i32 to index
      %c0_12 = arith.constant 0 : index
      %26 = vector.load %arg4[%25, %c0_12] : memref<32x128xf32, #tpu.memory_space<vmem>>, vector<32x128xf32>
      %27 = math.absf %24 : vector<32x128xf32>
      %cst = arith.constant 0.000000e+00 : f32
      %28 = vector.broadcast %cst : f32 to vector<32x128xf32>
      %29 = arith.subf %28, %27 : vector<32x128xf32>
      %30 = math.exp %29 : vector<32x128xf32>
      %31 = math.log1p %30 : vector<32x128xf32>
      %cst_13 = arith.constant 0.000000e+00 : f32
      %32 = vector.broadcast %cst_13 : f32 to vector<32x128xf32>
      %33 = arith.maximumf %24, %32 : vector<32x128xf32>
      %34 = arith.mulf %24, %26 : vector<32x128xf32>
      %35 = arith.subf %33, %34 : vector<32x128xf32>
      %36 = arith.addf %35, %31 : vector<32x128xf32>
      %cst_14 = arith.constant 0.000000e+00 : f32
      %37 = vector.broadcast %cst_14 : f32 to vector<32x128xf32>
      %38 = arith.subf %37, %24 : vector<32x128xf32>
      %cst_15 = arith.constant 2.000000e+00 : f32
      %39 = vector.broadcast %cst_15 : f32 to vector<32x128xf32>
      %40 = arith.mulf %26, %39 : vector<32x128xf32>
      %cst_16 = arith.constant 1.000000e+00 : f32
      %41 = vector.broadcast %cst_16 : f32 to vector<32x128xf32>
      %42 = arith.subf %40, %41 : vector<32x128xf32>
      %43 = arith.mulf %38, %42 : vector<32x128xf32>
      %cst_17 = arith.constant 0.000000e+00 : f32
      %44 = vector.broadcast %cst_17 : f32 to vector<32x128xf32>
      %45 = arith.minimumf %43, %44 : vector<32x128xf32>
      %46 = arith.subf %45, %31 : vector<32x128xf32>
      %cst_18 = arith.constant 2.000000e+00 : f32
      %47 = vector.broadcast %cst_18 : f32 to vector<32x128xf32>
      %48 = arith.mulf %46, %47 : vector<32x128xf32>
      %49 = math.exp %48 : vector<32x128xf32>
      %50 = arith.mulf %49, %36 : vector<32x128xf32>
      %51 = vector.shape_cast %50 : vector<32x128xf32> to vector<4x8x128xf32>
      %cst_19 = arith.constant dense<0.000000e+00> : vector<8x128xf32>
      %52 = vector.multi_reduction <add>, %51, %cst_19 [0] : vector<4x8x128xf32> to vector<8x128xf32>
      %53 = arith.addf %20, %52 : vector<8x128xf32>
      %c0_20 = arith.constant 0 : index
      %c0_21 = arith.constant 0 : index
      %54 = vector.load %arg6[%c0_20, %c0_21] : memref<8x128xf32, #tpu.memory_space<vmem>>, vector<8x128xf32>
      tpu.vector_store %arg6[%c0_20, %c0_21], %53 {strides = array<i32>} : memref<8x128xf32, #tpu.memory_space<vmem>>, vector<8x128xf32>,
    } else {
    }
    %12 = arith.cmpi eq, %8, %3 : i32
    %c0_i32_4 = arith.constant 0 : i32
    %13 = arith.cmpi sgt, %4, %c0_i32_4 : i32
    %14 = arith.andi %12, %13 : i1
    %15 = arith.extui %14 : i1 to i32
    %c0_i32_5 = arith.constant 0 : i32
    %16 = arith.cmpi ne, %15, %c0_i32_5 : i32
    scf.if %16 {
      %c32_i32 = arith.constant 32 : i32
      %20 = arith.muli %c0_i32_2, %c32_i32 : i32
      %21 = tpu.assume_multiple %20, 32 : i32
      %22 = arith.index_cast %21 : i32 to index
      %c0_9 = arith.constant 0 : index
      %23 = vector.load %arg3[%22, %c0_9] : memref<32x128xf32, #tpu.memory_space<vmem>>, vector<32x128xf32>
      %24 = arith.index_cast %21 : i32 to index
      %c0_10 = arith.constant 0 : index
      %25 = vector.load %arg4[%24, %c0_10] : memref<32x128xf32, #tpu.memory_space<vmem>>, vector<32x128xf32>
      %26 = math.absf %23 : vector<32x128xf32>
      %cst = arith.constant 0.000000e+00 : f32
      %27 = vector.broadcast %cst : f32 to vector<32x128xf32>
      %28 = arith.subf %27, %26 : vector<32x128xf32>
      %29 = math.exp %28 : vector<32x128xf32>
      %30 = math.log1p %29 : vector<32x128xf32>
      %cst_11 = arith.constant 0.000000e+00 : f32
      %31 = vector.broadcast %cst_11 : f32 to vector<32x128xf32>
      %32 = arith.maximumf %23, %31 : vector<32x128xf32>
      %33 = arith.mulf %23, %25 : vector<32x128xf32>
      %34 = arith.subf %32, %33 : vector<32x128xf32>
      %35 = arith.addf %34, %30 : vector<32x128xf32>
      %cst_12 = arith.constant 0.000000e+00 : f32
      %36 = vector.broadcast %cst_12 : f32 to vector<32x128xf32>
      %37 = arith.subf %36, %23 : vector<32x128xf32>
      %cst_13 = arith.constant 2.000000e+00 : f32
      %38 = vector.broadcast %cst_13 : f32 to vector<32x128xf32>
      %39 = arith.mulf %25, %38 : vector<32x128xf32>
      %cst_14 = arith.constant 1.000000e+00 : f32
      %40 = vector.broadcast %cst_14 : f32 to vector<32x128xf32>
      %41 = arith.subf %39, %40 : vector<32x128xf32>
      %42 = arith.mulf %37, %41 : vector<32x128xf32>
      %cst_15 = arith.constant 0.000000e+00 : f32
      %43 = vector.broadcast %cst_15 : f32 to vector<32x128xf32>
      %44 = arith.minimumf %42, %43 : vector<32x128xf32>
      %45 = arith.subf %44, %30 : vector<32x128xf32>
      %cst_16 = arith.constant 2.000000e+00 : f32
      %46 = vector.broadcast %cst_16 : f32 to vector<32x128xf32>
      %47 = arith.mulf %45, %46 : vector<32x128xf32>
      %48 = math.exp %47 : vector<32x128xf32>
      %49 = arith.mulf %48, %35 : vector<32x128xf32>
      %50 = tpu.iota {dimensions = array<i32: 0>} : vector<32x128xi32>
      %51 = tpu.iota {dimensions = array<i32: 1>} : vector<32x128xi32>
      %c128_i32 = arith.constant 128 : i32
      %52 = vector.broadcast %c128_i32 : i32 to vector<32x128xi32>
      %53 = arith.muli %50, %52 : vector<32x128xi32>
      %54 = arith.addi %53, %51 : vector<32x128xi32>
      %c0_17 = arith.constant 0 : index
      %c0_18 = arith.constant 0 : index
      %55 = vector.load %arg6[%c0_17, %c0_18] : memref<8x128xf32, #tpu.memory_space<vmem>>, vector<8x128xf32>
      %56 = vector.broadcast %4 : i32 to vector<32x128xi32>
      %57 = arith.cmpi slt, %54, %56 : vector<32x128xi32>
      %cst_19 = arith.constant 0.000000e+00 : f32
      %58 = vector.broadcast %cst_19 : f32 to vector<32x128xf32>
      %59 = arith.select %57, %49, %58 : vector<32x128xi1>, vector<32x128xf32>
      %60 = vector.shape_cast %59 : vector<32x128xf32> to vector<4x8x128xf32>
      %cst_20 = arith.constant dense<0.000000e+00> : vector<8x128xf32>
      %61 = vector.multi_reduction <add>, %60, %cst_20 [0] : vector<4x8x128xf32> to vector<8x128xf32>
      %62 = arith.addf %55, %61 : vector<8x128xf32>
      %c0_21 = arith.constant 0 : index
      %c0_22 = arith.constant 0 : index
      %63 = vector.load %arg6[%c0_21, %c0_22] : memref<8x128xf32, #tpu.memory_space<vmem>>, vector<8x128xf32>
      tpu.vector_store %arg6[%c0_21, %c0_22], %62 {strides = array<i32>} : memref<8x128xf32, #tpu.memory_space<vmem>>, vector<8x128xf32>,
    } else {
    }
    %c1_i32_6 = arith.constant 1 : i32
    %c0_i32_7 = arith.constant 0 : i32
    %17 = arith.cmpi eq, %arg1, %c0_i32_7 : i32
    %18 = arith.extui %17 : i1 to i32
    %c0_i32_8 = arith.constant 0 : i32
    %19 = arith.cmpi ne, %18, %c0_i32_8 : i32
    scf.if %19 {
      %c0_9 = arith.constant 0 : index
      %c0_10 = arith.constant 0 : index
      %20 = vector.load %arg6[%c0_9, %c0_10] : memref<8x128xf32, #tpu.memory_space<vmem>>, vector<8x128xf32>
      %21 = vector.shape_cast %20 : vector<8x128xf32> to vector<1x8x128xf32>
      %cst = arith.constant dense<0.000000e+00> : vector<1xf32>
      %22 = vector.multi_reduction <add>, %21, %cst [1, 2] : vector<1x8x128xf32> to vector<1xf32>
      %23 = vector.shape_cast %22 : vector<1xf32> to vector<1x1x1xf32>
      %24 = vector.extract %23[0, 0, 0] : f32 from vector<1x1x1xf32>
      %c0_11 = arith.constant 0 : index
      %c0_12 = arith.constant 0 : index
      %25 = memref.load %arg5[%c0_11, %c0_12] : memref<1x1xf32, #tpu.memory_space<smem>>
      memref.store %24, %arg5[%c0_11, %c0_12] : memref<1x1xf32, #tpu.memory_space<smem>>
    } else {
    }
    return
  }
  func.func @transform_0(%arg0: i32, %arg1: i32, %arg2: memref<2xi32, #tpu.memory_space<smem>>) -> (i32, i32) {
    %c1_i32 = arith.constant 1 : i32
    %0 = arith.muli %arg0, %c1_i32 : i32
    %1 = arith.addi %0, %arg1 : i32
    %c0_i32 = arith.constant 0 : i32
    %2 = arith.minsi %1, %c0_i32 : i32
    %c0_i32_0 = arith.constant 0 : i32
    %c0_i32_1 = arith.constant 0 : i32
    return %2, %c0_i32_0 : i32, i32
  }
  func.func @transform_1(%arg0: i32, %arg1: i32, %arg2: memref<2xi32, #tpu.memory_space<smem>>) -> (i32, i32) {
    %c1_i32 = arith.constant 1 : i32
    %0 = arith.muli %arg0, %c1_i32 : i32
    %1 = arith.addi %0, %arg1 : i32
    %c0_i32 = arith.constant 0 : i32
    %2 = arith.minsi %1, %c0_i32 : i32
    %c0_i32_0 = arith.constant 0 : i32
    %c0_i32_1 = arith.constant 0 : i32
    return %2, %c0_i32_0 : i32, i32
  }
  func.func @transform_2(%arg0: i32, %arg1: i32, %arg2: memref<2xi32, #tpu.memory_space<smem>>) -> (i32, i32) {
    %c0_i32 = arith.constant 0 : i32
    %c0_i32_0 = arith.constant 0 : i32
    return %arg0, %c0_i32 : i32, i32
  }
}

</mosaic_0001>

<bundles_post_ra>
// kernel: tpu_custom_call.1
= control target key start
LH: loop header
LB: loop body
LE: loop exit
PB: predicated region body
PF: predicated region fallthrough
CT: control target
= control target key end

     0   :  { %s544_s15 = smov [#allocation4]   ;;  %s675_s0 = inlined_call_operand.hbm [shape: s32[2], index: 0, kind: input, shape index: {}]   ;;  %s676_s1 = inlined_call_operand.hbm [shape: f32[32,128], index: 1, kind: input, shape index: {}]   ;;  %s677_s2 = inlined_call_operand.hbm [shape: f32[32,128], index: 2, kind: input, shape index: {}]   ;;  %s678_s3 = inlined_call_operand.hbm [shape: f32[1,1], index: 3, kind: output, shape index: {}]  }
   0x1   :  { %s9_s14 = sshll.u32 %s675_s0, 4  ;;  %s10_s14 = int_to_ptr.hbm [resolvable:$true] %s9_s14 }
   0x2   :  { %12 = dma.hbm_to_smem %s10_s14, 16, %s544_s15, [#allocation3] }
   0x3   :  { %536 = dma.done.wait [#allocation3], 16 }
   0x4   :  { %537 = vsyncadd [#allocation3], 4294967280 }
   0x5   :  { %15 = sfence }
   0x6   :  { %16 = vsyncpa [#allocation6], 0 }
   0x7   :  { %17 = vsyncpa [#allocation9], 0 }
   0x8   :  { %18 = vsyncpa [#allocation7], 0  ;;  %s29_s18 = sshll.u32 %s676_s1, 4  ;;  %s545_s19 = smov [#allocation5]   ;;  %s30_s18 = int_to_ptr.hbm [resolvable:$true] %s29_s18 }
   0x9   :  { %s31_s20 = sshll.u32 %s545_s19, 4  ;;  %s48_s0 = sshll.u32 %s677_s2, 4  ;;  %s32_s20 = int_to_ptr.vmem [resolvable:$true] %s31_s20  ;;  %s49_s0 = int_to_ptr.hbm [resolvable:$true] %s48_s0 }
   0xa   :  { %s546_s23 = smov 128   ;;  %s547_s24 = smov 8  }
   0xb   :  { %37 = dma.hbm_to_vmem [thread:$0]  %s30_s18, 512, %s32_s20, [#allocation6], %s546_s23, %s546_s23, %s547_s24  }
   0xc   :  { %s548_s25 = smov [#allocation8]  }
   0xd   :  { %s50_s26 = sshll.u32 %s548_s25, 4  ;;  %s51_s26 = int_to_ptr.vmem [resolvable:$true] %s50_s26 }
   0xe   :  { %56 = dma.hbm_to_vmem [thread:$0]  %s49_s0, 512, %s51_s26, [#allocation9], %s546_s23, %s546_s23, %s547_s24  }
   0xf   :  { %538 = dma.done.wait [#allocation6], 512  }
  0x10   :  { %539 = vsyncadd [#allocation6], 4294966784 }
  0x11   :  { %540 = dma.done.wait [#allocation9], 512  }
  0x12   :  { %541 = vsyncadd [#allocation9], 4294966784  ;;  %s580_s1 = sld [smem:[#allocation4]]  ;;  %v549_v0 = vmov 0.0  }
  0x13   :  { %77 = vst [vmem:[#allocation2] sm:$0xff] %v549_v0  ;;  %s582_s27 = sld [smem:[#allocation4 + $0x1]] }
  0x18   :  { %p397_p0 = scmp.le.s32.totalorder %s580_s1, 0 }
  0x1a   :  { %84 = sbr.rel (%p397_p0) target bundleno = 82 (0x52), region = 25 }
  0x1f   :  { %v585_v1 = vld [vmem:[#allocation5] sm:$0xff]  ;;  %v587_v2 = vld [vmem:[#allocation5 + $0x8] sm:$0xff]  ;;  %v589_v3 = vld [vmem:[#allocation5 + $0x10] sm:$0xff] }
  0x20   :  { %v591_v4 = vld [vmem:[#allocation5 + $0x18] sm:$0xff]  ;;  %v94_v5 = vand.u32 2147483647, %v585_v1  ;;  %v95_v6 = vand.u32 2147483647, %v587_v2  ;;  %v597_v14 = vld [vmem:[#allocation8] sm:$0xff] }
  0x21   :  { %v96_v7 = vand.u32 2147483647, %v589_v3  ;;  %v97_v8 = vand.u32 2147483647, %v591_v4  ;;  %v599_v18 = vld [vmem:[#allocation8 + $0x8] sm:$0xff]  ;;  %v601_v19 = vld [vmem:[#allocation8 + $0x10] sm:$0xff] }
  0x22   :  { %v98_v9 = vsub.f32 0.0, %v94_v5  ;;  %v99_v10 = vsub.f32 0.0, %v95_v6  ;;  %v603_v20 = vld [vmem:[#allocation8 + $0x18] sm:$0xff]  ;;  %v166_v21 = vmul.f32 2.0, %v597_v14  ;;  %v167_v22 = vmul.f32 2.0, %v599_v18 }
  0x23   :  { %v100_v11 = vsub.f32 0.0, %v96_v7  ;;  %v101_v12 = vsub.f32 0.0, %v97_v8  ;;  %v168_v23 = vmul.f32 2.0, %v601_v19  ;;  %v169_v24 = vmul.f32 2.0, %v603_v20 }
  0x24   :  { %v102_v13 = vmul.f32 1.442695, %v98_v9  ;;  %v104_v15 = vmul.f32 1.442695, %v99_v10  ;;  %v162_v26 = vsub.f32 0.0, %v585_v1  ;;  %v398_v27 = vadd.f32 -1.0, %v166_v21 }
  0x25   :  { %v106_v16 = vmul.f32 1.442695, %v100_v11  ;;  %v108_v17 = vmul.f32 1.442695, %v101_v12  ;;  %v163_v31 = vsub.f32 0.0, %v587_v2  ;;  %v164_v32 = vsub.f32 0.0, %v589_v3 }
  0x26   :  { %416 = vpow2.f32 %v102_v13  ;;  %v165_v36 = vsub.f32 0.0, %v591_v4  ;;  %v399_v37 = vadd.f32 -1.0, %v167_v22  ;;  %v400_v40 = vadd.f32 -1.0, %v168_v23 }
  0x27   :  { %418 = vpow2.f32 %v104_v15  ;;  %v401_v41 = vadd.f32 -1.0, %v169_v24  ;;  %v174_v44 = vmul.f32 %v398_v27, %v162_v26  ;;  %v146_v11 = vmax.f32 %v585_v1, 0.0 }
  0x28   :  { %420 = vpow2.f32 %v106_v16  ;;  %v175_v51 = vmul.f32 %v399_v37, %v163_v31  ;;  %v176_v53 = vmul.f32 %v400_v40, %v164_v32  ;;  %v150_v22 = vmul.f32 %v597_v14, %v585_v1 }
  0x29   :  { %422 = vpow2.f32 %v108_v17  ;;  %v177_v56 = vmul.f32 %v401_v41, %v165_v36  ;;  %v178_v60 = vmin.f32 %v174_v44, 0.0  ;;  %v147_v24 = vmax.f32 %v587_v2, 0.0 }
  0x2a   :  { %v179_v0 = vmin.f32 %v175_v51, 0.0  ;;  %v180_v7 = vmin.f32 %v176_v53, 0.0  ;;  %v149_v1 = vmax.f32 %v591_v4, 0.0  ;;  %v153_v14 = vmul.f32 %v603_v20, %v591_v4  ;;  %v85_v51 = vld [vmem:[#allocation2] sm:$0xff] }
  0x2b   :  { %v181_v15 = vmin.f32 %v177_v56, 0.0 }
  0x2c   :  { %v417_v25 = vpop.eup %416 }
  0x2d   :  { %v419_v28 = vpop.eup %418  ;;  %v110_v29 = vadd.f32 1.0, %v417_v25  ;;  %v113_v30 = vmul.f32 -0.5, %v417_v25  ;;  %v116_v45 = vand.u32 2147483647, %v417_v25 }
  0x2e   :  { %v421_v33 = vpop.eup %420  ;;  %v119_v34 = vadd.f32 1.0, %v419_v28  ;;  %v122_v35 = vmul.f32 -0.5, %v419_v28  ;;  %v125_v48 = vand.u32 2147483647, %v419_v28 }
  0x2f   :  { %v423_v38 = vpop.eup %422  ;;  %424 = vlog2.f32 %v110_v29  ;;  %v128_v39 = vadd.f32 1.0, %v421_v33  ;;  %v114_v42 = vadd.f32 1.0, %v113_v30  ;;  %v131_v43 = vmul.f32 -0.5, %v421_v33 }
  0x30   :  { %426 = vlog2.f32 %v119_v34  ;;  %v123_v46 = vadd.f32 1.0, %v122_v35  ;;  %v137_v47 = vadd.f32 1.0, %v423_v38  ;;  %v140_v50 = vmul.f32 -0.5, %v423_v38 }
  0x31   :  { %428 = vlog2.f32 %v128_v39  ;;  %v132_v49 = vadd.f32 1.0, %v131_v43  ;;  %v134_v52 = vand.u32 2147483647, %v421_v33  ;;  %v115_v54 = vmul.f32 %v417_v25, %v114_v42 }
  0x32   :  { %430 = vlog2.f32 %v137_v47  ;;  %v141_v55 = vadd.f32 1.0, %v140_v50  ;;  %vm117_vm0 = vcmp.lt.f32.partialorder %v116_v45, 0.0004427343  ;;  %v124_v58 = vmul.f32 %v419_v28, %v123_v46 }
  0x33   :  { %v143_v59 = vand.u32 2147483647, %v423_v38  ;;  %vm126_vm1 = vcmp.lt.f32.partialorder %v125_v48, 0.0004427343  ;;  %v133_v63 = vmul.f32 %v421_v33, %v132_v49  ;;  %vm135_vm2 = vcmp.lt.f32.partialorder %v134_v52, 0.0004427343 }
  0x34   :  { %v142_v10 = vmul.f32 %v423_v38, %v141_v55  ;;  %v151_v25 = vmul.f32 %v599_v18, %v587_v2  ;;  %v148_v29 = vmax.f32 %v589_v3, 0.0  ;;  %v152_v30 = vmul.f32 %v601_v19, %v589_v3 }
  0x35   :  { %v425_v57 = vpop.eup %424  ;;  %vm144_vm3 = vcmp.lt.f32.partialorder %v143_v59, 0.0004427343  ;;  %v154_v35 = vsub.f32 %v146_v11, %v150_v22  ;;  %v157_v3 = vsub.f32 %v149_v1, %v153_v14 }
  0x36   :  { %v427_v61 = vpop.eup %426  ;;  %v112_v62 = vmul.f32 0.6931472, %v425_v57  ;;  %v155_v2 = vsub.f32 %v147_v24, %v151_v25  ;;  %v156_v38 = vsub.f32 %v148_v29, %v152_v30 }
  0x37   :  { %v429_v5 = vpop.eup %428  ;;  %v121_v6 = vmul.f32 0.6931472, %v427_v61 }
  0x38   :  { %v118_v8 = vsel %vm117_vm0, %v115_v54, %v112_v62  ;;  %v130_v9 = vmul.f32 0.6931472, %v429_v5  ;;  %v431_v12 = vpop.eup %430 }
  0x39   :  { %v127_v13 = vsel %vm126_vm1, %v124_v58, %v121_v6  ;;  %v182_v16 = vsub.f32 %v178_v60, %v118_v8  ;;  %v139_v21 = vmul.f32 0.6931472, %v431_v12  ;;  %v158_v19 = vadd.f32 %v154_v35, %v118_v8 }
  0x3a   :  { %v136_v17 = vsel %vm135_vm2, %v133_v63, %v130_v9  ;;  %v183_v23 = vsub.f32 %v179_v0, %v127_v13  ;;  %v159_v40 = vadd.f32 %v155_v2, %v127_v13 }
  0x3b   :  { %v184_v26 = vsub.f32 %v180_v7, %v136_v17  ;;  %v186_v27 = vmul.f32 2.0, %v182_v16  ;;  %v145_v28 = vsel %vm144_vm3, %v142_v10, %v139_v21  ;;  %v160_v41 = vadd.f32 %v156_v38, %v136_v17 }
  0x3c   :  { %v187_v31 = vmul.f32 2.0, %v183_v23  ;;  %v185_v32 = vsub.f32 %v181_v15, %v145_v28  ;;  %v161_v44 = vadd.f32 %v157_v3, %v145_v28 }
  0x3d   :  { %v188_v33 = vmul.f32 2.0, %v184_v26  ;;  %v190_v34 = vmul.f32 1.442695, %v186_v27 }
  0x3e   :  { %v192_v36 = vmul.f32 1.442695, %v187_v31  ;;  %v189_v18 = vmul.f32 2.0, %v185_v32 }
  0x3f   :  { %432 = vpow2.f32 %v190_v34  ;;  %v194_v37 = vmul.f32 1.442695, %v188_v33 }
  0x40   :  { %434 = vpow2.f32 %v192_v36  ;;  %v196_v39 = vmul.f32 1.442695, %v189_v18 }
  0x41   :  { %436 = vpow2.f32 %v194_v37 }
  0x42   :  { %438 = vpow2.f32 %v196_v39 }
  0x45   :  { %v433_v42 = vpop.eup %432 }
  0x46   :  { %v435_v43 = vpop.eup %434  ;;  %v198_v45 = vmul.f32 %v433_v42, %v158_v19 }
  0x47   :  { %v437_v4 = vpop.eup %436  ;;  %v199_v20 = vmul.f32 %v435_v43, %v159_v40 }
  0x48   :  { %v200_v46 = vmul.f32 %v437_v4, %v160_v41  ;;  %v439_v47 = vpop.eup %438 }
  0x49   :  { %v202_v48 = vadd.f32 %v199_v20, %v198_v45  ;;  %v201_v49 = vmul.f32 %v439_v47, %v161_v44 }
  0x4b   :  { %v203_v50 = vadd.f32 %v202_v48, %v200_v46 }
  0x4d   :  { %v204_v52 = vadd.f32 %v203_v50, %v201_v49 }
  0x4f   :  { %v205_v53 = vadd.f32 %v204_v52, %v85_v51 }
  0x51   :  { %206 = vst [vmem:[#allocation2] sm:$0xff] %v205_v53 }
  0x52 PF:  { %p402_p1 = scmp.eq.s32.totalorder %s580_s1, 0  ;;  %p208_p2 = scmp.gt.s32.totalorder %s582_s27, 0 }
  0x54   :  { %p209_p3 = pnand %p402_p1, %p208_p2 }
  0x56   :  { %212 = sbr.rel (%p209_p3) target bundleno = 143 (0x8f), region = 29 }
  0x5b   :  { %v627_v54 = vld [vmem:[#allocation5] sm:$0xff]  ;;  %v629_v55 = vld [vmem:[#allocation5 + $0x8] sm:$0xff]  ;;  %v631_v56 = vld [vmem:[#allocation5 + $0x10] sm:$0xff]  ;;  %v329_v17 = vlaneseq }
  0x5c   :  { %v633_v57 = vld [vmem:[#allocation5 + $0x18] sm:$0xff]  ;;  %v221_v58 = vand.u32 2147483647, %v627_v54  ;;  %v222_v59 = vand.u32 2147483647, %v629_v55  ;;  %v217_v7 = vld [vmem:[#allocation8] sm:$0xff] }
  0x5d   :  { %v223_v60 = vand.u32 2147483647, %v631_v56  ;;  %v224_v61 = vand.u32 2147483647, %v633_v57  ;;  %v218_v11 = vld [vmem:[#allocation8 + $0x8] sm:$0xff]  ;;  %v639_v12 = vld [vmem:[#allocation8 + $0x10] sm:$0xff]  ;;  %v645_v22 = vmul.f32 %v217_v7, %v627_v54 }
  0x5e   :  { %v225_v62 = vsub.f32 0.0, %v221_v58  ;;  %v226_v63 = vsub.f32 0.0, %v222_v59  ;;  %v641_v13 = vld [vmem:[#allocation8 + $0x18] sm:$0xff]  ;;  %v293_v15 = vmul.f32 2.0, %v217_v7  ;;  %v294_v16 = vmul.f32 2.0, %v218_v11 }
  0x5f   :  { %v227_v0 = vsub.f32 0.0, %v223_v60  ;;  %v228_v5 = vsub.f32 0.0, %v224_v61  ;;  %v273_v21 = vmax.f32 %v627_v54, 0.0  ;;  %v295_v23 = vmul.f32 2.0, %v639_v12 }
  0x60   :  { %v229_v6 = vmul.f32 1.442695, %v225_v62  ;;  %v231_v8 = vmul.f32 1.442695, %v226_v63  ;;  %v296_v24 = vmul.f32 2.0, %v641_v13  ;;  %v274_v26 = vmax.f32 %v629_v55, 0.0 }
  0x61   :  { %v233_v9 = vmul.f32 1.442695, %v227_v0  ;;  %v235_v10 = vmul.f32 1.442695, %v228_v5  ;;  %v651_v27 = vmul.f32 %v218_v11, %v629_v55  ;;  %v289_v28 = vsub.f32 0.0, %v627_v54 }
  0x62   :  { %440 = vpow2.f32 %v229_v6  ;;  %v403_v29 = vadd.f32 -1.0, %v293_v15  ;;  %v290_v33 = vsub.f32 0.0, %v629_v55  ;;  %v291_v34 = vsub.f32 0.0, %v631_v56 }
  0x63   :  { %442 = vpow2.f32 %v231_v8  ;;  %v292_v36 = vsub.f32 0.0, %v633_v57  ;;  %v404_v2 = vadd.f32 -1.0, %v294_v16  ;;  %v405_v38 = vadd.f32 -1.0, %v295_v23 }
  0x64   :  { %444 = vpow2.f32 %v233_v9  ;;  %v406_v39 = vadd.f32 -1.0, %v296_v24  ;;  %v301_v40 = vmul.f32 %v403_v29, %v289_v28  ;;  %v275_v47 = vmax.f32 %v631_v56, 0.0 }
  0x65   :  { %446 = vpow2.f32 %v235_v10  ;;  %v302_v20 = vmul.f32 %v404_v2, %v290_v33  ;;  %v303_v48 = vmul.f32 %v405_v38, %v291_v34  ;;  %v330_v52 = vshrl.u32 %v329_v17, 7 }
  0x66   :  { %v304_v51 = vmul.f32 %v406_v39, %v292_v36  ;;  %v305_v60 = vmin.f32 %v301_v40, 0.0  ;;  %v276_v7 = vmax.f32 %v633_v57, 0.0  ;;  %v279_v15 = vmul.f32 %v639_v12, %v631_v56 }
  0x67   :  { %v306_v0 = vmin.f32 %v302_v20, 0.0  ;;  %v307_v8 = vmin.f32 %v303_v48, 0.0  ;;  %v333_v36 = vadd.s32 24, %v330_v52  ;;  %v335_v56 = vand.u32 127, %v329_v17 }
  0x68   :  { %v441_v25 = vpop.eup %440  ;;  %v308_v24 = vmin.f32 %v304_v51, 0.0  ;;  %v281_v38 = vsub.f32 %v273_v21, %v645_v22  ;;  %v283_v17 = vsub.f32 %v275_v47, %v279_v15  ;;  %v345_v22 = vstv %s582_s27 }
  0x69   :  { %v443_v30 = vpop.eup %442  ;;  %v237_v31 = vadd.f32 1.0, %v441_v25  ;;  %v240_v32 = vmul.f32 -0.5, %v441_v25  ;;  %v243_v41 = vand.u32 2147483647, %v441_v25 }
  0x6a   :  { %v445_v1 = vpop.eup %444  ;;  %v246_v14 = vadd.f32 1.0, %v443_v30  ;;  %v249_v35 = vmul.f32 -0.5, %v443_v30  ;;  %v252_v44 = vand.u32 2147483647, %v443_v30 }
  0x6b   :  { %v447_v18 = vpop.eup %446  ;;  %448 = vlog2.f32 %v237_v31  ;;  %v255_v37 = vadd.f32 1.0, %v445_v1  ;;  %v241_v3 = vadd.f32 1.0, %v240_v32  ;;  %v258_v19 = vmul.f32 -0.5, %v445_v1 }
  0x6c   :  { %450 = vlog2.f32 %v246_v14  ;;  %v250_v42 = vadd.f32 1.0, %v249_v35  ;;  %v264_v43 = vadd.f32 1.0, %v447_v18  ;;  %v267_v4 = vmul.f32 -0.5, %v447_v18 }
  0x6d   :  { %452 = vlog2.f32 %v255_v37  ;;  %v259_v45 = vadd.f32 1.0, %v258_v19  ;;  %v261_v46 = vand.u32 2147483647, %v445_v1  ;;  %v242_v49 = vmul.f32 %v441_v25, %v241_v3 }
  0x6e   :  { %454 = vlog2.f32 %v264_v43  ;;  %v268_v50 = vadd.f32 1.0, %v267_v4  ;;  %vm244_vm4 = vcmp.lt.f32.partialorder %v243_v41, 0.0004427343  ;;  %v251_v58 = vmul.f32 %v443_v30, %v250_v42 }
  0x6f   :  { %v270_v59 = vand.u32 2147483647, %v447_v18  ;;  %vm253_vm5 = vcmp.lt.f32.partialorder %v252_v44, 0.0004427343  ;;  %v260_v63 = vmul.f32 %v445_v1, %v259_v45  ;;  %vm262_vm6 = vcmp.lt.f32.partialorder %v261_v46, 0.0004427343 }
  0x70   :  { %v269_v11 = vmul.f32 %v447_v18, %v268_v50  ;;  %v331_v31 = vadd.s32 8, %v330_v52  ;;  %v280_v32 = vmul.f32 %v641_v13, %v633_v57  ;;  %v332_v1 = vadd.s32 16, %v330_v52 }
  0x71   :  { %v449_v53 = vpop.eup %448  ;;  %vm271_vm7 = vcmp.lt.f32.partialorder %v270_v59, 0.0004427343  ;;  %v336_v37 = vmul.u32 128, %v330_v52  ;;  %v282_v57 = vsub.f32 %v274_v26, %v651_v27  ;;  %v339_v42 = vmul.u32 128, %v333_v36 }
  0x72   :  { %v451_v61 = vpop.eup %450  ;;  %v239_v62 = vmul.f32 0.6931472, %v449_v53  ;;  %v337_v39 = vmul.u32 128, %v331_v31  ;;  %v338_v40 = vmul.u32 128, %v332_v1  ;;  %v284_v44 = vsub.f32 %v276_v7, %v280_v32 }
  0x73   :  { %v453_v5 = vpop.eup %452  ;;  %v248_v6 = vmul.f32 0.6931472, %v451_v61  ;;  %v340_v43 = vadd.s32 %v336_v37, %v335_v56  ;;  %v343_v4 = vadd.s32 %v339_v42, %v335_v56 }
  0x74   :  { %v245_v9 = vsel %vm244_vm4, %v242_v49, %v239_v62  ;;  %v257_v10 = vmul.f32 0.6931472, %v453_v5  ;;  %v455_v16 = vpop.eup %454  ;;  %v341_v21 = vadd.s32 %v337_v39, %v335_v56  ;;  %v342_v55 = vadd.s32 %v338_v40, %v335_v56 }
  0x75   :  { %v254_v23 = vsel %vm253_vm5, %v251_v58, %v248_v6  ;;  %v309_v25 = vsub.f32 %v305_v60, %v245_v9  ;;  %v266_v29 = vmul.f32 0.6931472, %v455_v16  ;;  %v285_v54 = vadd.f32 %v281_v38, %v245_v9 }
  0x76   :  { %v263_v28 = vsel %vm262_vm6, %v260_v63, %v257_v10  ;;  %v310_v30 = vsub.f32 %v306_v0, %v254_v23  ;;  %v286_v45 = vadd.f32 %v282_v57, %v254_v23  ;;  %vm346_vm8 = vcmp.lt.s32.totalorder %v340_v43, %v345_v22  ;;  %v344_v63 = vld [vmem:[#allocation2] sm:$0xff] }
  0x77   :  { %v311_v33 = vsub.f32 %v307_v8, %v263_v28  ;;  %v313_v34 = vmul.f32 2.0, %v309_v25  ;;  %v272_v14 = vsel %vm271_vm7, %v269_v11, %v266_v29  ;;  %v287_v26 = vadd.f32 %v283_v17, %v263_v28 }
  0x78   :  { %v314_v35 = vmul.f32 2.0, %v310_v30  ;;  %v312_v12 = vsub.f32 %v308_v24, %v272_v14  ;;  %v288_v46 = vadd.f32 %v284_v44, %v272_v14  ;;  %vm347_vm9 = vcmp.lt.s32.totalorder %v341_v21, %v345_v22 }
  0x79   :  { %v315_v2 = vmul.f32 2.0, %v311_v33  ;;  %v317_v18 = vmul.f32 1.442695, %v313_v34  ;;  %vm348_vm10 = vcmp.lt.s32.totalorder %v342_v55, %v345_v22  ;;  %vm349_vm11 = vcmp.lt.s32.totalorder %v343_v4, %v345_v22 }
  0x7a   :  { %v319_v13 = vmul.f32 1.442695, %v314_v35  ;;  %v316_v3 = vmul.f32 2.0, %v312_v12 }
  0x7b   :  { %456 = vpow2.f32 %v317_v18  ;;  %v321_v19 = vmul.f32 1.442695, %v315_v2 }
  0x7c   :  { %458 = vpow2.f32 %v319_v13  ;;  %v323_v41 = vmul.f32 1.442695, %v316_v3 }
  0x7d   :  { %460 = vpow2.f32 %v321_v19 }
  0x7e   :  { %462 = vpow2.f32 %v323_v41 }
  0x81   :  { %v457_v27 = vpop.eup %456 }
  0x82   :  { %v459_v20 = vpop.eup %458  ;;  %v325_v48 = vmul.f32 %v457_v27, %v285_v54 }
  0x83   :  { %v461_v47 = vpop.eup %460  ;;  %v326_v49 = vmul.f32 %v459_v20, %v286_v45 }
  0x84   :  { %v327_v50 = vmul.f32 %v461_v47, %v287_v26  ;;  %v350_v51 = vsel %vm346_vm8, %v325_v48, 0.0  ;;  %v463_v52 = vpop.eup %462 }
  0x85   :  { %v351_v53 = vsel %vm347_vm9, %v326_v49, 0.0  ;;  %v328_v58 = vmul.f32 %v463_v52, %v288_v46 }
  0x86   :  { %v352_v59 = vsel %vm348_vm10, %v327_v50, 0.0  ;;  %v354_v60 = vadd.f32 %v351_v53, %v350_v51 }
  0x87   :  { %v353_v61 = vsel %vm349_vm11, %v328_v58, 0.0 }
  0x88   :  { %v355_v62 = vadd.f32 %v354_v60, %v352_v59 }
  0x8a   :  { %v356_v0 = vadd.f32 %v355_v62, %v353_v61 }
  0x8c   :  { %v357_v5 = vadd.f32 %v356_v0, %v344_v63 }
  0x8e   :  { %358 = vst [vmem:[#allocation2] sm:$0xff] %v357_v5 }
  0x8f PF:  { %s379_s29 = sshll.u32 %s678_s3, 4  ;;  %s550_s4 = smov [#allocation10]   ;;  %s380_s29 = int_to_ptr.hbm [resolvable:$true] %s379_s29 }
  0x95   :  { %v362_v6 = vld [vmem:[#allocation2] sm:$0xff] }
  0x96   :  { %363 = vadd.xlane.f32.xlu0 %v362_v6 }
 0x109   :  { %v364_v7 = vpop.xlane.xlu0 %363 }
 0x10a   :  { %v365_v8 = vrot.slane %v364_v7, 4 }
 0x10c   :  { %v366_v9 = vadd.f32 %v365_v8, %v364_v7 }
 0x10e   :  { %v367_v10 = vrot.slane %v366_v9, 2 }
 0x110   :  { %v368_v11 = vadd.f32 %v367_v10, %v366_v9 }
 0x112   :  { %v369_v15 = vrot.slane %v368_v11, 1 }
 0x114   :  { %v370_v16 = vadd.f32 %v369_v15, %v368_v11 }
 0x116   :  { %407 = vpush %v370_v16 }
 0x147   :  { %s408_s30 = spop %407 }
 0x148   :  { %373 = sst [smem:[#allocation10]] %s408_s30 }
 0x149   :  { %382 = dma.smem_to_hbm %s550_s4, 16, %s380_s29, [#allocation7]  }
 0x14a   :  { %542 = dma.done.wait [#allocation7], 16  }
 0x14b   :  { %543 = vsyncadd [#allocation7], 4294967280 }
 0x14c   :  { %387 = sfence }
 0x14d   :  { %388 = vsyncpa [#allocation6], 1 }
 0x14e   :  { %389 = vsyncpa [#allocation9], 1 }
 0x14f   :  { %390 = vsyncpa [#allocation7], 1 }

</bundles_post_ra>
